<compile_context>
chip_gen: v6e
topology: v6e:2x2x1
jax: 0.10.0
libtpu: 0.0.40
codegen_flags: <defaults>
</compile_context>

<pallas_src>
import jax
import jax.numpy as jnp
import numpy as np
from jax import lax
from jax.experimental import pallas as pl
from jax.experimental.pallas import tpu as pltpu


# ---------------------------------------------------------------------------
# VMEM budgeting
# ---------------------------------------------------------------------------

def _round_up(x, mult):
    return ((x + mult - 1) // mult) * mult


def _vmem_budget_bytes():
    """Generation-aware scoped-VMEM budget (leaves compiler headroom)."""
    phys = None
    try:
        info = pltpu.get_tpu_info()
        phys = getattr(info, "vmem_capacity_bytes", None)
        if phys is None:
            phys = getattr(info, "vmem_size_bytes", None)
    except Exception:
        phys = None
    if phys is None:
        # Conservative fallback: assume the smallest (v7x-style, 64 MiB) part.
        phys = 64 * 1024 * 1024
    if phys <= 64 * 1024 * 1024:
        return 48 * 1024 * 1024      # v7x: 64 MiB physical -> ~48 MiB usable
    return 100 * 1024 * 1024          # v5e/v6e: 128 MiB physical -> ~100 MiB


def _choose_q_tile(n, m, num_heads, d_att, itemsize, budget, scores_itemsize):
    """Largest q_tile (multiple of 8, <=512) whose working set fits `budget`."""
    n8 = _round_up(max(n, 1), 8)
    # Double-buffered K and V blocks (re-fetched per head, so keep 2 buffers).
    fixed = 2 * 2 * m * d_att * itemsize
    # Per query-row, double-buffered: scores block + Q block + ctx block.
    per_row = 2 * (m * scores_itemsize + 2 * d_att * itemsize)
    avail = int(budget * 0.9) - fixed
    tq = max(avail, 0) // max(per_row, 1)
    tq = int(min(tq, 512, n8))
    tq = max(8, (tq // 8) * 8)
    # v7x megacore: make sure the grid has >= 2 steps when possible so both
    # TensorCores get work (with num_heads >= 2 this is already satisfied).
    n_pad = _round_up(n, tq)
    if num_heads * (n_pad // tq) < 2 and n8 >= 16:
        tq = max(8, ((n8 // 2) // 8) * 8)
    return tq


# ---------------------------------------------------------------------------
# Kernel
# ---------------------------------------------------------------------------

def _mha_head_kernel_factory(d_att, use_bf16_matmul):
    inv_scale = 1.0 / (float(d_att) ** 0.5)

    def kernel(q_ref, k_ref, v_ref, ctx_ref, scores_ref):
        # Refs (head axis squeezed): q (tq, d_att), k/v (m, d_att),
        # ctx (tq, d_att), scores (tq, m).
        # Hoist the 1/sqrt(d_att) scale onto Q: tq*d_att multiplies instead of
        # tq*m, and the stored scores stay identical to torch's scaled scores.
        q = q_ref[...] * inv_scale
        k = k_ref[...]
        v = v_ref[...]
        if use_bf16_matmul:
            q = q.astype(jnp.bfloat16)
            k = k.astype(jnp.bfloat16)

        # scores = Qh @ Kh^T as a contraction over the feature dim — no
        # materialized transpose of Kh.
        s = lax.dot_general(
            q, k,
            dimension_numbers=(((1,), (1,)), ((), ())),
            preferred_element_type=jnp.float32,
        )                                              # (tq, m), f32
        scores_ref[...] = s.astype(scores_ref.dtype)   # lane-dense (m) store

        # Numerically-stable softmax over the key axis (F.softmax(dim=-1)).
        s_max = jnp.max(s, axis=-1, keepdims=True)
        p = jnp.exp(s - s_max)
        denom = jnp.sum(p, axis=-1, keepdims=True)
        p = p / denom                                  # exact normalization

        ctx = jnp.dot(p.astype(v.dtype), v, preferred_element_type=jnp.float32)
        ctx_ref[...] = ctx.astype(ctx_ref.dtype)

    return kernel


# ---------------------------------------------------------------------------
# Wrapper
# ---------------------------------------------------------------------------

def multiheaded_attention(query, key, value, *, d_model, num_heads,
                          q_tile=None, scores_dtype=jnp.float32,
                          use_bf16_matmul=False):
    """Pallas implementation of MultiheadedAttention.forward.

    Args:
      query: (n, d_model)
      key:   (m, d_model)
      value: (m, d_model)
    Returns:
      (context (n, d_model), attn_scores (num_heads, n, m))
    """
    n, dm = query.shape
    m, _ = key.shape
    assert dm == d_model
    d_att = d_model // num_heads
    assert d_att * num_heads == d_model

    itemsize = jnp.dtype(query.dtype).itemsize
    scores_itemsize = jnp.dtype(scores_dtype).itemsize
    budget = _vmem_budget_bytes()

    if q_tile is None:
        q_tile = _choose_q_tile(n, m, num_heads, d_att, itemsize, budget,
                                scores_itemsize)
    q_tile = max(8, (int(q_tile) // 8) * 8)

    # Pad the query axis to a multiple of q_tile (never collapse to one tile).
    n_pad = _round_up(n, q_tile)

    # Layout plumbing: (seq, d_model) -> (num_heads, seq, d_att) so every grid
    # step sees a lane-dense per-head tile and heads are parallel grid work.
    qh = query.reshape(n, num_heads, d_att).transpose(1, 0, 2)
    kh = key.reshape(m, num_heads, d_att).transpose(1, 0, 2)
    vh = value.reshape(m, num_heads, d_att).transpose(1, 0, 2)
    if n_pad != n:
        qh = jnp.pad(qh, ((0, 0), (0, n_pad - n), (0, 0)))

    grid = (num_heads, n_pad // q_tile)
    kernel = _mha_head_kernel_factory(d_att, use_bf16_matmul)

    ctx_h, scores = pl.pallas_call(
        kernel,
        out_shape=(
            jax.ShapeDtypeStruct((num_heads, n_pad, d_att), query.dtype),
            jax.ShapeDtypeStruct((num_heads, n_pad, m), scores_dtype),
        ),
        grid_spec=pltpu.PrefetchScalarGridSpec(
            num_scalar_prefetch=0,
            grid=grid,
            in_specs=[
                pl.BlockSpec((None, q_tile, d_att), lambda h, i: (h, i, 0)),  # Q tile
                pl.BlockSpec((None, m, d_att), lambda h, i: (h, 0, 0)),       # full K (per head)
                pl.BlockSpec((None, m, d_att), lambda h, i: (h, 0, 0)),       # full V (per head)
            ],
            out_specs=(
                pl.BlockSpec((None, q_tile, d_att), lambda h, i: (h, i, 0)),  # ctx per head
                pl.BlockSpec((None, q_tile, m), lambda h, i: (h, i, 0)),      # scores
            ),
        ),
        compiler_params=pltpu.CompilerParams(
            dimension_semantics=("parallel", "parallel"),
            vmem_limit_bytes=budget,
        ),
    )(qh, kh, vh)

    if n_pad != n:
        ctx_h = ctx_h[:, :n, :]
        scores = scores[:, :n, :]

    context = ctx_h.transpose(1, 0, 2).reshape(n, d_model)
    return context, scores


# ---------------------------------------------------------------------------
# Reference + self-test
# ---------------------------------------------------------------------------

def _reference(query, key, value, *, d_model, num_heads):
    n = query.shape[0]
    m = key.shape[0]
    d_att = d_model // num_heads
    qh = query.reshape(n, num_heads, d_att).transpose(1, 0, 2)
    kh = key.reshape(m, num_heads, d_att).transpose(1, 0, 2)
    vh = value.reshape(m, num_heads, d_att).transpose(1, 0, 2)
    scores = jnp.einsum("hnd,hmd->hnm", qh, kh) / (d_att ** 0.5)
    weights = jax.nn.softmax(scores, axis=-1)
    ctx = jnp.einsum("hnm,hmd->hnd", weights, vh)
    context = ctx.transpose(1, 0, 2).reshape(n, d_model)
    return context, scores


def _run_case(n, m, d_model, num_heads, seed):
    kq, kk, kv = jax.random.split(jax.random.PRNGKey(seed), 3)
    query = jax.random.normal(kq, (n, d_model), dtype=jnp.float32)
    key_ = jax.random.normal(kk, (m, d_model), dtype=jnp.float32)
    value = jax.random.normal(kv, (m, d_model), dtype=jnp.float32)

    ctx, scores = multiheaded_attention(
        query, key_, value, d_model=d_model, num_heads=num_heads
    )
    ctx = jax.block_until_ready(ctx)
    scores = jax.block_until_ready(scores)

    ctx_ref, scores_ref = _reference(
        query, key_, value, d_model=d_model, num_heads=num_heads
    )
    np.testing.assert_allclose(
        np.asarray(scores), np.asarray(scores_ref), rtol=2e-5, atol=2e-5
    )
    np.testing.assert_allclose(
        np.asarray(ctx), np.asarray(ctx_ref), rtol=1e-4, atol=1e-4
    )


if __name__ == "__main__":
    d_model = 32
    num_heads = 4

    # Base case (n divisible by the chosen q_tile).
    _run_case(n=8, m=8, d_model=d_model, num_heads=num_heads, seed=0)
    # Non-divisible query length: exercises the query-axis padding path.
    _run_case(n=12, m=8, d_model=d_model, num_heads=num_heads, seed=1)

    print("KERNEL_OK")
</pallas_src>

<mosaic_0001>
module attributes {stable_mosaic.version = 11 : i64} {
  func.func @kernel(%arg0: i32, %arg1: i32, %arg2: memref<1x8x8xf32, #tpu.memory_space<vmem>>, %arg3: memref<1x8x8xf32, #tpu.memory_space<vmem>>, %arg4: memref<1x8x8xf32, #tpu.memory_space<vmem>>, %arg5: memref<1x8x8xf32, #tpu.memory_space<vmem>>, %arg6: memref<1x8x8xf32, #tpu.memory_space<vmem>>) attributes {dimension_semantics = [#tpu.dimension_semantics<parallel>, #tpu.dimension_semantics<parallel>], iteration_bounds = array<i64: 4, 1>, scalar_prefetch = 0 : i64, scratch_operands = 0 : i64, tpu.core_type = #tpu.core_type<tc>, window_params = [{transform_indices = @transform_0, window_bounds = array<i64: 1, 8, 8>}, {transform_indices = @transform_1, window_bounds = array<i64: 1, 8, 8>}, {transform_indices = @transform_2, window_bounds = array<i64: 1, 8, 8>}, {transform_indices = @transform_3, window_bounds = array<i64: 1, 8, 8>}, {transform_indices = @transform_4, window_bounds = array<i64: 1, 8, 8>}]} {
    %c0 = arith.constant 0 : index
    %c0_0 = arith.constant 0 : index
    %c0_1 = arith.constant 0 : index
    %0 = vector.load %arg2[%c0, %c0_0, %c0_1] : memref<1x8x8xf32, #tpu.memory_space<vmem>>, vector<1x8x8xf32>
    %1 = vector.shape_cast %0 : vector<1x8x8xf32> to vector<8x8xf32>
    %cst = arith.constant 0.353553385 : f32
    %2 = vector.broadcast %cst : f32 to vector<8x8xf32>
    %3 = arith.mulf %1, %2 : vector<8x8xf32>
    %c0_2 = arith.constant 0 : index
    %c0_3 = arith.constant 0 : index
    %c0_4 = arith.constant 0 : index
    %4 = vector.load %arg3[%c0_2, %c0_3, %c0_4] : memref<1x8x8xf32, #tpu.memory_space<vmem>>, vector<1x8x8xf32>
    %5 = vector.shape_cast %4 : vector<1x8x8xf32> to vector<8x8xf32>
    %c0_5 = arith.constant 0 : index
    %c0_6 = arith.constant 0 : index
    %c0_7 = arith.constant 0 : index
    %6 = vector.load %arg4[%c0_5, %c0_6, %c0_7] : memref<1x8x8xf32, #tpu.memory_space<vmem>>, vector<1x8x8xf32>
    %7 = vector.shape_cast %6 : vector<1x8x8xf32> to vector<8x8xf32>
    %cst_8 = arith.constant dense<0.000000e+00> : vector<8x8xf32>
    %8 = tpu.matmul %3, %5, %cst_8 {dimension_numbers = #tpu.dot_dimension_numbers<[1], [1], [0], [0], [0, 0, 1, 0], [], []>} : vector<8x8xf32>, vector<8x8xf32>, vector<8x8xf32> -> vector<8x8xf32>
    %c0_9 = arith.constant 0 : index
    %c0_10 = arith.constant 0 : index
    %c0_11 = arith.constant 0 : index
    %9 = vector.load %arg6[%c0_9, %c0_10, %c0_11] : memref<1x8x8xf32, #tpu.memory_space<vmem>>, vector<1x8x8xf32>
    %10 = vector.shape_cast %9 : vector<1x8x8xf32> to vector<8x8xf32>
    %11 = vector.shape_cast %8 : vector<8x8xf32> to vector<1x8x8xf32>
    tpu.vector_store %arg6[%c0_9, %c0_10, %c0_11], %11 {strides = array<i32>} : memref<1x8x8xf32, #tpu.memory_space<vmem>>, vector<1x8x8xf32>,
    %cst_12 = arith.constant dense<0xFF800000> : vector<8xf32>
    %12 = vector.multi_reduction <maximumf>, %8, %cst_12 [1] : vector<8x8xf32> to vector<8xf32>
    %13 = vector.shape_cast %12 : vector<8xf32> to vector<8x1xf32>
    %14 = vector.broadcast %13 : vector<8x1xf32> to vector<8x8xf32>
    %15 = arith.subf %8, %14 : vector<8x8xf32>
    %16 = math.exp %15 : vector<8x8xf32>
    %cst_13 = arith.constant dense<0.000000e+00> : vector<8xf32>
    %17 = vector.multi_reduction <add>, %16, %cst_13 [1] : vector<8x8xf32> to vector<8xf32>
    %18 = vector.shape_cast %17 : vector<8xf32> to vector<8x1xf32>
    %19 = vector.broadcast %18 : vector<8x1xf32> to vector<8x8xf32>
    %20 = arith.divf %16, %19 : vector<8x8xf32>
    %cst_14 = arith.constant dense<0.000000e+00> : vector<8x8xf32>
    %21 = tpu.matmul %20, %7, %cst_14 {dimension_numbers = #tpu.dot_dimension_numbers<[1], [0], [0], [1], [0, 0, 1, 1], [], []>} : vector<8x8xf32>, vector<8x8xf32>, vector<8x8xf32> -> vector<8x8xf32>
    %c0_15 = arith.constant 0 : index
    %c0_16 = arith.constant 0 : index
    %c0_17 = arith.constant 0 : index
    %22 = vector.load %arg5[%c0_15, %c0_16, %c0_17] : memref<1x8x8xf32, #tpu.memory_space<vmem>>, vector<1x8x8xf32>
    %23 = vector.shape_cast %22 : vector<1x8x8xf32> to vector<8x8xf32>
    %24 = vector.shape_cast %21 : vector<8x8xf32> to vector<1x8x8xf32>
    tpu.vector_store %arg5[%c0_15, %c0_16, %c0_17], %24 {strides = array<i32>} : memref<1x8x8xf32, #tpu.memory_space<vmem>>, vector<1x8x8xf32>,
    return
  }
  func.func @transform_0(%arg0: i32, %arg1: i32) -> (i32, i32, i32) {
    %c0_i32 = arith.constant 0 : i32
    %c0_i32_0 = arith.constant 0 : i32
    return %arg0, %arg1, %c0_i32 : i32, i32, i32
  }
  func.func @transform_1(%arg0: i32, %arg1: i32) -> (i32, i32, i32) {
    %c0_i32 = arith.constant 0 : i32
    %c0_i32_0 = arith.constant 0 : i32
    %c0_i32_1 = arith.constant 0 : i32
    return %arg0, %c0_i32, %c0_i32_0 : i32, i32, i32
  }
  func.func @transform_2(%arg0: i32, %arg1: i32) -> (i32, i32, i32) {
    %c0_i32 = arith.constant 0 : i32
    %c0_i32_0 = arith.constant 0 : i32
    %c0_i32_1 = arith.constant 0 : i32
    return %arg0, %c0_i32, %c0_i32_0 : i32, i32, i32
  }
  func.func @transform_3(%arg0: i32, %arg1: i32) -> (i32, i32, i32) {
    %c0_i32 = arith.constant 0 : i32
    %c0_i32_0 = arith.constant 0 : i32
    return %arg0, %arg1, %c0_i32 : i32, i32, i32
  }
  func.func @transform_4(%arg0: i32, %arg1: i32) -> (i32, i32, i32) {
    %c0_i32 = arith.constant 0 : i32
    %c0_i32_0 = arith.constant 0 : i32
    return %arg0, %arg1, %c0_i32 : i32, i32, i32
  }
}

</mosaic_0001>

<bundles_post_ra>
// kernel: tpu_custom_call.1
= control target key start
LH: loop header
LB: loop body
LE: loop exit
PB: predicated region body
PF: predicated region fallthrough
CT: control target
= control target key end

     0   :  { %s1261_s0 = inlined_call_operand.hbm [shape: f32[4,8,8], index: 0, kind: input, shape index: {}]   ;;  %s1262_s1 = inlined_call_operand.hbm [shape: f32[4,8,8], index: 1, kind: input, shape index: {}]   ;;  %s1263_s2 = inlined_call_operand.hbm [shape: f32[4,8,8], index: 2, kind: input, shape index: {}]   ;;  %s1264_s3 = inlined_call_operand.hbm [shape: f32[4,8,8], index: 3, kind: output, shape index: {0}]   ;;  %s1265_s4 = inlined_call_operand.hbm [shape: f32[4,8,8], index: 4, kind: output, shape index: {1}]  }
   0x1   :  { %1269 = sst [smem:[#allocation18_spill]] %s1262_s1 }
   0x2   :  { %10 = vsyncpa [#allocation3], 0 }
   0x3   :  { %12 = vsyncpa [#allocation3 + $0x1], 0 }
   0x4   :  { %13 = vsyncpa [#allocation6], 0 }
   0x5   :  { %15 = vsyncpa [#allocation6 + $0x1], 0 }
   0x6   :  { %16 = vsyncpa [#allocation4], 0 }
   0x7   :  { %18 = vsyncpa [#allocation4 + $0x1], 0 }
   0x8   :  { %19 = vsyncpa [#allocation10], 0 }
   0x9   :  { %21 = vsyncpa [#allocation10 + $0x1], 0  ;;  %s1025_s15 = smov 0   ;;  %s1027_s16 = smov 0  }
   0xa   :  { %s1029_s17 = smov 0   ;;  %s1031_s18 = smov 0  }
   0xb   :  { %s1033_s19 = smov 0   ;;  %s1035_s20 = smov 0  }
   0xc LB: > { %1270 = sst [smem:[#allocation15_spill]] %s987_s19  ;;  %s1056_s21 = sadd.s32 4294967295, %s991_s20   ;;  %s991_s20 = sphi %s1035_s20, %s27_s20   ;;  %s987_s19 = sphi %s1033_s19, %s1283_s19   ;;  %s983_s18 = sphi %s1031_s18, %s1282_s18   ;;  %s979_s17 = sphi %s1029_s17, %s1286_s17   ;;  %s975_s16 = sphi %s1027_s16, %s1285_s16   ;;  %s971_s15 = sphi %s1025_s15, %s1284_s15  }
   0xd   : > { %s672_s22 = sadd.s32 4294967294, %s991_s20   ;;  %s39_s23 = sadd.s32 1, %s987_s19 }
   0xe   : > { %s48_s24 = sadd.s32 1, %s979_s17  ;;  %p41_p0 = scmp.ge.s32.totalorder %s39_s23, 4 }
   0xf   : > { %p55_p1 = scmp.ne.s32.totalorder %s979_s17, %s975_s16  ;;  %p56_p2 = scmp.eq.s32.totalorder %s991_s20, 0 }
  0x10   : > { %p61_p3 = scmp.ne.s32.totalorder %s975_s16, %s971_s15  ;;  %s1288_s23 = smov (%p41_p0, %s39_s23), 0 }
  0x11   : > { %1271 = sst [smem:[#allocation16_spill]] %s1288_s23  ;;  %p1068_p4 = por %p56_p2, %p55_p1 }
  0x12   : > { %p62_p5 = scmp.eq.s32.totalorder %s1056_s21, 0  ;;  %s43_s26 = ssub.s32 %s987_s19, %s1288_s23 }
  0x13   : > { %p139_p6 = scmp.eq.s32.totalorder %s1056_s21, 3  ;;  %p46_p7 = scmp.eq.s32.totalorder %s43_s26, 0 }
  0x14   : > { %p1076_p8 = por %p62_p5, %p61_p3  ;;  %p145_p10 = scmp.eq.s32.totalorder %s672_s22, 3 }
  0x15   : > { %p1080_p9 = por %p139_p6, %p55_p1  ;;  %p737_p12 = scmp.lt.s32.totalorder %s991_s20, 4 }
  0x16   : > { %s1085_s29 = scalar_select %p46_p7, %s979_s17, %s48_s24  }
  0x17   : > { %p1087_p11 = por %p145_p10, %p61_p3  ;;  %s1266_s5 = sand.u32 1, %s979_s17  }
  0x18   : > { %1275 = sst [smem:[#allocation17_spill]] %s1085_s29  ;;  %s1095_s6 = sshll.u32 %s1266_s5, 3 }
  0x19   : > { %s1098_s7 = sshll.u32 %s987_s19, 7  ;;  %p1102_p13 = pnand %p737_p12, %p1068_p4 }
  0x1a   : > { %s212_s9 = sand.u32 1, %s991_s20   ;;  %s1278_s1 = sld [smem:[#allocation18_spill]] }
  0x1b   : > { %s216_s13 = scalar_lea.vmem [#allocation5], %s1095_s6  ;;  %p681_p0 = scmp.ge.s32.totalorder %s991_s20, 1 }
  0x1c   : > { %s223_s14 = sshll.u32 %s216_s13, 4  ;;  %p246_p1 = scmp.lt.s32.totalorder %s991_s20, 5  ;;  %s224_s14 = int_to_ptr.vmem [resolvable:$true] %s223_s14 }
  0x1d   : > { %s1114_s22 = scalar_lea.sflag [#allocation6], %s212_s9  ;;  %p795_p2 = pneg %p1102_p13 }
  0x1e   : > { %s806_s24 = scalar_lea.vmem %s224_s14, 128  ;;  %s993_s25 = smov [#allocation5]  }
  0x1f   : > { %p807_p3 = scmp.ne.s32.totalorder %s224_s14, %s806_s24  ;;  %s811_s26 = sshll.u32 %s993_s25, 4  ;;  %s812_s26 = int_to_ptr.vmem [resolvable:$false] %s811_s26 }
  0x20   : > { %s221_s12 = scalar_lea.hbm %s1278_s1, %s1098_s7  ;;  %s813_s10 = scalar_lea.vmem %s812_s26, 256 }
  0x21   : > { %p809_p4 = pnand %p807_p3, %p795_p2  ;;  %p814_p6 = scmp.lt.s32.totalorder %s224_s14, %s812_s26 }
  0x22   : > { %p815_p7 = scmp.lt.s32.totalorder %s813_s10, %s806_s24 }
  0x23   : > { %p810_p5 = pneg %p809_p4 }
  0x24   : > { %p816_p10 = por %p815_p7, %p814_p6 }
  0x26   : > { %p817_p12 = pnand %p816_p10, %p810_p5 }
  0x28   : > { %820 = shalt.err (!%p817_p12)
}
  0x29   : > { %726 = dma.hbm_to_vmem [thread:$0]  (!%p1102_p13), %s221_s12, 128, %s224_s14, %s1114_s22  }
  0x2a   : > { %p1128_p3 = pnand %p681_p0, %p246_p1  ;;  %s203_s24 = scalar_lea.hbm %s1261_s0, %s1098_s7 }
  0x2b   : > { %s197_s25 = scalar_lea.vmem [#allocation2], %s1095_s6  ;;  %s239_s1 = scalar_lea.hbm %s1263_s2, %s1098_s7 }
  0x2c   : > { %s205_s26 = sshll.u32 %s197_s25, 4  ;;  %s1280_s23 = sand.u32 1, %s979_s17   ;;  %s206_s26 = int_to_ptr.vmem [resolvable:$true] %s205_s26 }
  0x2d   : > { %s194_s19 = scalar_lea.sflag [#allocation3], %s1280_s23  ;;  %s834_s12 = scalar_lea.vmem %s206_s26, 128 }
  0x2e   : > { %p835_p4 = scmp.ne.s32.totalorder %s206_s26, %s834_s12  ;;  %s994_s14 = smov [#allocation2]  }
  0x2f   : > { %s839_s29 = sshll.u32 %s994_s14, 4  ;;  %s840_s29 = int_to_ptr.vmem [resolvable:$false] %s839_s29 }
  0x30   : > { %p837_p0 = pnand %p835_p4, %p795_p2  ;;  %s841_s11 = scalar_lea.vmem %s840_s29, 256 }
  0x31   : > { %p842_p5 = scmp.lt.s32.totalorder %s206_s26, %s840_s29  ;;  %p843_p6 = scmp.lt.s32.totalorder %s841_s11, %s834_s12 }
  0x32   : > { %p838_p1 = pneg %p837_p0 }
  0x33   : > { %p844_p7 = por %p843_p6, %p842_p5 }
  0x35   : > { %p845_p10 = pnand %p844_p7, %p838_p1 }
  0x37   : > { %848 = shalt.err (!%p845_p10)
}
  0x38   : > { %723 = dma.hbm_to_vmem [thread:$0]  (!%p1102_p13), %s203_s24, 128, %s206_s26, %s194_s19  }
  0x39   : > { %s234_s23 = scalar_lea.vmem [#allocation7], %s1095_s6  ;;  %s995_s25 = smov [#allocation7]  }
  0x3a   : > { %s241_s5 = sshll.u32 %s234_s23, 4  ;;  %s867_s29 = sshll.u32 %s995_s25, 4  ;;  %s242_s5 = int_to_ptr.vmem [resolvable:$true] %s241_s5  ;;  %s868_s29 = int_to_ptr.vmem [resolvable:$false] %s867_s29 }
  0x3b   : > { %s862_s13 = scalar_lea.vmem %s242_s5, 128  ;;  %s869_s10 = scalar_lea.vmem %s868_s29, 256 }
  0x3c   : > { %p863_p12 = scmp.ne.s32.totalorder %s242_s5, %s862_s13  ;;  %p870_p1 = scmp.lt.s32.totalorder %s242_s5, %s868_s29 }
  0x3d   : > { %p871_p5 = scmp.lt.s32.totalorder %s869_s10, %s862_s13 }
  0x3e   : > { %p865_p4 = pnand %p863_p12, %p795_p2 }
  0x3f   : > { %p872_p6 = por %p871_p5, %p870_p1 }
  0x40   : > { %p866_p0 = pneg %p865_p4 }
  0x42   : > { %p873_p7 = pnand %p872_p6, %p866_p0 }
  0x44   : > { %876 = shalt.err (!%p873_p7)
}
  0x45   : > { %729 = dma.hbm_to_vmem [thread:$0]  (!%p1102_p13), %s239_s1, 128, %s242_s5, %s1114_s22  }
  0x46   : > { %250 = sbr.rel (%p1128_p3) target bundleno = 797 (0x31d), region = 32  ;;  %s1163_s24 = sand.u32 (!%p1128_p3), 1, %s975_s16  }
  0x47   : > { %s1166_s26 = sshll.u32 (!%p1128_p3), %s1163_s24, 3  ;;  %s253_s8 = scalar_lea.sflag (!%p1128_p3), [#allocation3], %s1163_s24 }
  0x48   : > { %s256_s12 = scalar_lea.vmem (!%p1128_p3), [#allocation2], %s1166_s26 }
  0x4b   : > { %954 = dma.done.wait (%p1076_p8), %s253_s8, 128  }
  0x4c   : > { %956 = vsyncadd (%p1076_p8), %s253_s8, 4294967168  ;;  %s261_s1 = sand.u32 1, %s1056_s21   ;;  %s265_s22 = scalar_lea.vmem [#allocation5], %s1166_s26 }
  0x4d   : > { %s262_s7 = scalar_lea.sflag [#allocation6], %s261_s1 }
  0x4e   : > { %958 = dma.done.wait (%p1076_p8), %s262_s7, 256  }
  0x4f   : > { %960 = vsyncadd (%p1076_p8), %s262_s7, 4294967040  ;;  %v996_v0 = vmov 0.0   ;;  %vm997_vm0 = vmmov 0   ;;  %vm318_vm1 = vcmask 64512   ;;  %v316_v1 = vld [vmem:[%s265_s22] sm:$0xff]  ;;  %v314_v2 = vld [vmem:[%s256_s12] sm:$0xff] }
  0x50   : > { %700 = vmatprep.subr.mxu0 %v996_v0  ;;  %702 = vmatprep.mubr.msk.f32.mxu0 %vm997_vm0, %v996_v0  ;;  %v315_v3 = vmul.f32 0.35355338, %v314_v2  ;;  %s313_s21 = scalar_lea.vmem [#allocation9], %s1166_s26  ;;  %s274_s27 = scalar_lea.vmem [#allocation7], %s1166_s26 }
  0x51   : > { %705 = vmatprep.subr.mxu1 %v996_v0  ;;  %707 = vmatprep.mubr.msk.f32.mxu1 %vm997_vm0, %v996_v0  ;;  %v317_v12 = vld [vmem:[%s274_s27] sm:$0xff]  ;;  %s692_s9 = sshll.u32 %s983_s18, 7  ;;  %s515_s5 = sshll.u32 %s313_s21, 4  ;;  %s516_s5 = int_to_ptr.vmem [resolvable:$true] %s515_s5 }
  0x52   : > { %701 = vmatpush3.xpose.msk.msra.mxu0 %vm318_vm1, %v316_v1  ;;  %706 = vmatpush3.msra.mxu1 %v317_v12  ;;  %s513_s23 = scalar_lea.hbm %s1265_s4, %s692_s9  ;;  %s487_s13 = scalar_lea.sflag [#allocation10], %s1163_s24 }
  0x53   : > { %s877_s25 = scalar_lea.vmem %s516_s5, 128  ;;  %s998_s29 = smov [#allocation9]  }
  0x54   : > { %p878_p8 = scmp.ne.s32.totalorder %s516_s5, %s877_s25  ;;  %s881_s10 = sshll.u32 %s998_s29, 4  ;;  %s882_s10 = int_to_ptr.vmem [resolvable:$false] %s881_s10 }
  0x55   : > { %703 = vmatmul.mubr.msk.f32.vlgmr.msra.gmra.mxu0 %vm318_vm1, %v315_v3  ;;  %s883_s19 = scalar_lea.vmem %s882_s10, 256  ;;  %p884_p3 = scmp.lt.s32.totalorder %s516_s5, %s882_s10 }
  0x56   : > { %p879_p13 = pnand %p878_p8, %p1080_p9  ;;  %p885_p10 = scmp.lt.s32.totalorder %s883_s19, %s877_s25 }
  0x58   : > { %p880_p2 = pneg %p879_p13  ;;  %p886_p12 = por %p885_p10, %p884_p3 }
  0x5a   : > { %p887_p4 = pnand %p886_p12, %p880_p2 }
 0x115   : > { %v391_v4 = vpop.f32.mrf.mxu0 }
 0x116   : > { %395 = vst.msk [vmem:[%s313_s21] sm:$0xff] %vm318_vm1, %v391_v4  ;;  %v396_v5 = vsel %vm318_vm1, %v391_v4, -inf }
 0x117   : > { %397 = vmax.xlane.f32.xlu0 %v396_v5  ;;  %v704_v6 = vpop.f32.mrf.mxu0 }
 0x1a0   : > { %v398_v7 = vpop.xlane.xlu0 %397 }
 0x1a1   : > { %v399_v8 = vsub.f32 %v391_v4, %v398_v7 }
 0x1a3   : > { %v400_v9 = vmul.f32 1.442695, %v399_v8 }
 0x1a5   : > { %789 = vpow2.f32 %v400_v9 }
 0x1b2   : > { %v790_v10 = vpop.eup %789 }
 0x1b3   : > { %v402_v11 = vsel %vm318_vm1, %v790_v10, 0.0 }
 0x1b4   : > { %403 = vadd.xlane.f32.xlu0 %v402_v11 }
 0x23d   : > { %v404_v13 = vpop.xlane.xlu0 %403 }
 0x23e   : > { %791 = vrcp.f32 %v404_v13 }
 0x24b   : > { %v792_v14 = vpop.eup %791 }
 0x24c   : > { %v406_v15 = vmul.f32 %v792_v14, %v790_v10 }
 0x24e   : > { %708 = vmatmul.mubr.msk.f32.vlgmr.msra.gmra.mxu1 %vm318_vm1, %v406_v15 }
 0x24f   : > { %890 = shalt.err (!%p887_p4)
}
 0x250   : > { %s891_s6 = scalar_lea.hbm %s513_s23, 128  ;;  %s895_s1 = scalar_lea.hbm %s1265_s4, 512 }
 0x251   : > { %p892_p0 = scmp.ne.s32.totalorder %s513_s23, %s891_s6  ;;  %p896_p6 = scmp.lt.s32.totalorder %s513_s23, %s1265_s4 }
 0x252   : > { %p897_p7 = scmp.lt.s32.totalorder %s895_s1, %s891_s6 }
 0x253   : > { %p893_p1 = pnand %p892_p0, %p1080_p9 }
 0x254   : > { %p898_p8 = por %p897_p7, %p896_p6 }
 0x255   : > { %p894_p5 = pneg %p893_p1 }
 0x257   : > { %p899_p13 = pnand %p898_p8, %p894_p5 }
 0x259   : > { %902 = shalt.err (!%p899_p13)
}
 0x25a   : > { %717 = dma.vmem_to_hbm [thread:$0]  (%p1080_p9), %s516_s5, 128, %s513_s23, %s487_s13  }
 0x25b   : > { %s306_s21 = scalar_lea.vmem [#allocation8], %s1166_s26  ;;  %s1213_s25 = scalar_lea.hbm %s1264_s3, %s692_s9 }
 0x25c   : > { %s501_s27 = sshll.u32 %s306_s21, 4  ;;  %s482_s29 = scalar_lea.sflag [#allocation4], %s1163_s24  ;;  %s1215_s27 = int_to_ptr.vmem [resolvable:$true] %s501_s27 }
 0x25d   : > { %s903_s10 = scalar_lea.vmem %s1215_s27, 128  ;;  %s999_s18 = smov [#allocation8]  }
 0x25e   : > { %p904_p2 = scmp.ne.s32.totalorder %s1215_s27, %s903_s10  ;;  %s907_s26 = sshll.u32 %s999_s18, 4  ;;  %s908_s26 = int_to_ptr.vmem [resolvable:$false] %s907_s26 }
 0x25f   : > { %s909_s9 = scalar_lea.vmem %s908_s26, 256  ;;  %p910_p12 = scmp.lt.s32.totalorder %s1215_s27, %s908_s26 }
 0x260   : > { %p905_p3 = pnand %p904_p2, %p1080_p9  ;;  %p911_p4 = scmp.lt.s32.totalorder %s909_s9, %s903_s10 }
 0x262   : > { %p906_p10 = pneg %p905_p3  ;;  %p912_p0 = por %p911_p4, %p910_p12 }
 0x264   : > { %p913_p1 = pnand %p912_p0, %p906_p10 }
 0x30e   : > { %v476_v16 = vpop.f32.mrf.mxu1 }
 0x30f   : > { %480 = vst.msk [vmem:[%s306_s21] sm:$0xff] %vm318_vm1, %v476_v16 }
 0x310   : > { %v709_v17 = vpop.f32.mrf.mxu1 }
 0x311   : > { %916 = shalt.err (!%p913_p1)
}
 0x312   : > { %s917_s23 = scalar_lea.hbm %s1213_s25, 128  ;;  %s921_s13 = scalar_lea.hbm %s1264_s3, 512 }
 0x313   : > { %p918_p5 = scmp.ne.s32.totalorder %s1213_s25, %s917_s23  ;;  %p922_p8 = scmp.lt.s32.totalorder %s1213_s25, %s1264_s3 }
 0x314   : > { %p923_p13 = scmp.lt.s32.totalorder %s921_s13, %s917_s23 }
 0x315   : > { %p919_p6 = pnand %p918_p5, %p1080_p9 }
 0x316   : > { %p924_p2 = por %p923_p13, %p922_p8 }
 0x317   : > { %p920_p7 = pneg %p919_p6 }
 0x319   : > { %p925_p3 = pnand %p924_p2, %p920_p7 }
 0x31b   : > { %928 = shalt.err (!%p925_p3)
}
 0x31c   : > { %716 = dma.vmem_to_hbm [thread:$0]  (%p1080_p9), %s1215_s27, 128, %s1213_s25, %s482_s29  }
 0x31d PF: > { %p738_p10 = scmp.ge.s32.totalorder %s991_s20, 2  ;;  %s527_s8 = sand.u32 1, %s971_s15  }
 0x31e   : > { %s528_s12 = scalar_lea.sflag [#allocation4], %s527_s8 }
 0x31f   : > { %p731_p12 = pnand %p738_p10, %p1087_p11 }
 0x321   : > { %p732_p4 = pneg %p731_p12 }
 0x323   : > { %962 = dma.done.wait (%p732_p4), %s528_s12, 128  }
 0x324   : > { %964 = vsyncadd (%p732_p4), %s528_s12, 4294967168  ;;  %s537_s1 = scalar_lea.sflag [#allocation10], %s527_s8 }
 0x325   : > { %966 = dma.done.wait (%p732_p4), %s537_s1, 128  }
 0x326   : > { %968 = vsyncadd (%p732_p4), %s537_s1, 4294967168  ;;  %s27_s20 = sadd.s32 1, %s991_s20   ;;  %s1281_s28 = sld [smem:[#allocation17_spill]] }
 0x327   : > { %p24_p0 = scmp.ge.s32.totalorder %s27_s20, 6   ;;  %s1282_s18 = sld [smem:[#allocation15_spill]] }
 0x328   : > { %s1283_s19 = sld [smem:[#allocation16_spill]]  ;;  %s1284_s15 = smov %s975_s16 }
 0x329   : > { %s1285_s16 = smov %s979_s17  ;;  %26 = sbr.rel (!%p24_p0) target bundleno = 12 (0xc), region = 118 }
 0x32c   : > { %s1286_s17 = smov %s1281_s28 }
 0x32e   :  { %542 = vsyncpa [#allocation3], 1 }
 0x32f   :  { %544 = vsyncpa [#allocation3 + $0x1], 1 }
 0x330   :  { %545 = vsyncpa [#allocation6], 1 }
 0x331   :  { %547 = vsyncpa [#allocation6 + $0x1], 1 }
 0x332   :  { %548 = vsyncpa [#allocation4], 1 }
 0x333   :  { %550 = vsyncpa [#allocation4 + $0x1], 1 }
 0x334   :  { %551 = vsyncpa [#allocation10], 1 }
 0x335   :  { %553 = vsyncpa [#allocation10 + $0x1], 1 }

</bundles_post_ra>
